<compile_context>
chip_gen: v7x
topology: tpu7x:2x2x1
jax: 0.10.0
libtpu: 0.0.40
codegen_flags: <defaults>
</compile_context>

<pallas_src>
import functools

import jax
import jax.numpy as jnp
from jax.experimental import pallas as pl
from jax.experimental.pallas import tpu as pltpu

_LANES = 128
_SUBLANES = 8
_MAX_BLOCK_ROWS = 4096      # (4096, 128) f32 = 2 MiB per buffer
_PAD_LOGIT = -1e4           # exp(_PAD_LOGIT) == 0 in f32 -> padded loss is exactly 0


def _row_align(*dtypes):
    """Sublane multiple so (rows, 128) blocks match the packed tile of every dtype."""
    align = _SUBLANES
    for d in dtypes:
        bits = jnp.dtype(d).itemsize * 8
        align = max(align, _SUBLANES * max(1, 32 // bits))
    return align


def _focal_math(x, t, alpha: float, gamma: float):
    """Elementwise sigmoid focal loss on f32 tiles (torchvision sigmoid_focal_loss)."""
    e = jnp.exp(-jnp.abs(x))                       # single exp, reused below (EUP slot)
    # numerically stable BCE-with-logits: max(x,0) - x*t + log(1 + exp(-|x|))
    ce = jnp.maximum(x, 0.0) - x * t + jnp.log1p(e)
    # exact sigmoid from e:  x>=0 -> 1/(1+e),  x<0 -> e/(1+e)
    p = jnp.where(x >= 0.0, 1.0, e) / (1.0 + e)
    # focal base: 1 - p_t = p + t - 2*p*t
    f = p + t - 2.0 * p * t
    g = float(gamma)
    if g.is_integer() and g >= 0.0:                # integer gamma: repeated multiply
        ig = int(g)
        if ig == 0:
            focal = jnp.ones_like(f)
        else:
            focal = f
            for _ in range(ig - 1):
                focal = focal * f
    else:
        focal = jnp.power(f, g)
    loss = ce * focal
    if alpha >= 0.0:
        # alpha_t = alpha*t + (1-alpha)*(1-t) = (1-alpha) + (2*alpha-1)*t
        loss = ((1.0 - alpha) + (2.0 * alpha - 1.0) * t) * loss
    return loss


def _focal_none_kernel(x_ref, t_ref, o_ref, *, alpha, gamma):
    loss = _focal_math(x_ref[...].astype(jnp.float32),
                       t_ref[...].astype(jnp.float32), alpha, gamma)
    o_ref[...] = loss.astype(o_ref.dtype)


def _focal_sum_kernel(x_ref, t_ref, o_ref, *, alpha, gamma, steps, blocks_total,
                      block_rows, valid_rows):
    c = pl.program_id(0)          # shard ("parallel" -> both TCs on megacore chips)
    i = pl.program_id(1)          # step within shard ("arbitrary")
    b = c * steps + i             # global block index

    @pl.when(i == 0)
    def _():
        o_ref[...] = jnp.zeros_like(o_ref)

    @pl.when(b < blocks_total)    # skip the duplicated/clamped trailing step of shard 1
    def _():
        loss = _focal_math(x_ref[...].astype(jnp.float32),
                           t_ref[...].astype(jnp.float32), alpha, gamma)
        if valid_rows % block_rows != 0:
            # Only emitted when the grid is ragged: rows past `valid_rows` in the last
            # block are undefined and must be selected away.  Padded-but-in-bounds rows
            # are already exactly-zero loss (pad logit = _PAD_LOGIT, target = 0).
            lim = valid_rows - b * block_rows
            row_ids = jax.lax.broadcasted_iota(jnp.int32, loss.shape, 0)
            loss = jnp.where(row_ids < lim, loss, 0.0)
        # full-vreg (8, 128) accumulation: plain VALU adds, no cross-sublane XLU reduce
        o_ref[...] += jnp.sum(loss.reshape(-1, _SUBLANES, _LANES), axis=0)


def sigmoid_focal_loss_pallas(inputs, targets, alpha: float, gamma: float = 2.0,
                              reduction: str = "none"):
    if reduction not in ("none", "mean", "sum"):
        raise ValueError(f"Invalid reduction: {reduction}")

    orig_shape = inputs.shape
    orig_dtype = inputs.dtype
    n = inputs.size

    align = _row_align(inputs.dtype, targets.dtype)
    tile = align * _LANES
    n_pad = pl.cdiv(n, tile) * tile
    x_flat = inputs.reshape(-1)
    t_flat = targets.reshape(-1)
    if n_pad != n:  # only pay the pad copy when there actually is a tail
        # pad logit chosen so padded elements produce an exactly-zero loss
        x_flat = jnp.pad(x_flat, (0, n_pad - n), constant_values=_PAD_LOGIT)
        t_flat = jnp.pad(t_flat, (0, n_pad - n))
    x2 = x_flat.reshape(-1, _LANES)
    t2 = t_flat.reshape(-1, _LANES)
    rows = x2.shape[0]

    block_rows = min(_MAX_BLOCK_ROWS, rows)        # multiple of `align`, or full dim
    blocks_total = pl.cdiv(rows, block_rows)

    if reduction == "none":
        kernel = functools.partial(_focal_none_kernel,
                                   alpha=float(alpha), gamma=float(gamma))
        out2d = pl.pallas_call(
            kernel,
            out_shape=jax.ShapeDtypeStruct((rows, _LANES), orig_dtype),
            grid=(blocks_total,),
            in_specs=[pl.BlockSpec((block_rows, _LANES), lambda i: (i, 0)),
                      pl.BlockSpec((block_rows, _LANES), lambda i: (i, 0))],
            out_specs=pl.BlockSpec((block_rows, _LANES), lambda i: (i, 0)),
            compiler_params=pltpu.CompilerParams(dimension_semantics=("parallel",)),
        )(x2, t2)
        loss_flat = out2d.reshape(-1)
        if n_pad != n:
            loss_flat = loss_flat[:n]
        return loss_flat.reshape(orig_shape)

    # reduction == "sum" / "mean": fused in-kernel reduction (loss never hits HBM).
    # 2-D (shard, step) grid: "parallel" shard axis lets megacore chips use both TCs.
    num_shards = 2 if blocks_total >= 2 else 1
    steps = pl.cdiv(blocks_total, num_shards)

    def in_map(c, i):
        # clamp so the duplicated trailing step of the last shard stays in bounds
        return (jnp.minimum(c * steps + i, blocks_total - 1), 0)

    kernel = functools.partial(_focal_sum_kernel,
                               alpha=float(alpha), gamma=float(gamma),
                               steps=int(steps), blocks_total=int(blocks_total),
                               block_rows=int(block_rows), valid_rows=int(rows))
    partial_sums = pl.pallas_call(
        kernel,
        out_shape=jax.ShapeDtypeStruct((num_shards * _SUBLANES, _LANES), jnp.float32),
        grid=(num_shards, steps),
        in_specs=[pl.BlockSpec((block_rows, _LANES), in_map),
                  pl.BlockSpec((block_rows, _LANES), in_map)],
        out_specs=pl.BlockSpec((_SUBLANES, _LANES), lambda c, i: (c, 0)),
        compiler_params=pltpu.CompilerParams(
            dimension_semantics=("parallel", "arbitrary")),
    )(x2, t2)
    total = jnp.sum(partial_sums)                  # <= 2048 floats -> negligible
    if reduction == "mean":
        total = total / n
    return total.astype(orig_dtype)


class BinaryFocalLossWithLogits:
    def __init__(self, alpha: float, gamma: float = 2.0, reduction: str = "none"):
        self.alpha = alpha
        self.gamma = gamma
        self.reduction = reduction

    def __call__(self, inputs, targets):
        return sigmoid_focal_loss_pallas(inputs, targets, self.alpha, self.gamma,
                                         self.reduction)


def _reference(x, t, alpha, gamma, reduction):
    x = x.astype(jnp.float32)
    t = t.astype(jnp.float32)
    p = jax.nn.sigmoid(x)
    ce = jnp.maximum(x, 0.0) - x * t + jnp.log1p(jnp.exp(-jnp.abs(x)))
    p_t = p * t + (1.0 - p) * (1.0 - t)
    loss = ce * jnp.power(1.0 - p_t, gamma)
    if alpha >= 0.0:
        loss = (alpha * t + (1.0 - alpha) * (1.0 - t)) * loss
    if reduction == "mean":
        return jnp.mean(loss)
    if reduction == "sum":
        return jnp.sum(loss)
    return loss


if __name__ == "__main__":
    key = jax.random.PRNGKey(0)
    k1, k2, k3, k4 = jax.random.split(key, 4)

    # NCHW-shaped logits and binary targets, as the PyTorch module would see.
    x = jax.random.normal(k1, (2, 4, 16, 16), dtype=jnp.float32)
    target = jax.random.bernoulli(k2, 0.5, (2, 4, 16, 16)).astype(jnp.float32)

    ref_none = _reference(x, target, 0.25, 2.0, "none")

    # reduction='none' (default module config)
    loss_fn = BinaryFocalLossWithLogits(alpha=0.25, gamma=2.0, reduction="none")
    out = jax.block_until_ready(loss_fn(x, target))
    assert out.shape == x.shape
    assert jnp.allclose(out, ref_none, atol=1e-5, rtol=1e-5)

    # fused reductions
    out_mean = jax.block_until_ready(
        BinaryFocalLossWithLogits(0.25, 2.0, "mean")(x, target))
    assert jnp.allclose(out_mean, jnp.mean(ref_none), atol=1e-5, rtol=1e-5)
    out_sum = jax.block_until_ready(
        BinaryFocalLossWithLogits(0.25, 2.0, "sum")(x, target))
    assert jnp.allclose(out_sum, jnp.sum(ref_none), atol=1e-4, rtol=1e-5)

    # odd-sized input exercising the padded tail path
    x2 = jax.random.normal(k3, (3, 5, 7, 9), dtype=jnp.float32)
    t2 = jax.random.bernoulli(k4, 0.5, (3, 5, 7, 9)).astype(jnp.float32)
    ref2 = _reference(x2, t2, 0.25, 2.0, "none")
    out2 = jax.block_until_ready(BinaryFocalLossWithLogits(0.25, 2.0, "none")(x2, t2))
    assert jnp.allclose(out2, ref2, atol=1e-5, rtol=1e-5)
    out2_sum = jax.block_until_ready(BinaryFocalLossWithLogits(0.25, 2.0, "sum")(x2, t2))
    assert jnp.allclose(out2_sum, jnp.sum(ref2), atol=1e-4, rtol=1e-5)

    print("KERNEL_OK")
</pallas_src>

<mosaic_0001>
module attributes {stable_mosaic.version = 11 : i64} {
  func.func @_focal_none_kernel(%arg0: i32, %arg1: memref<16x128xf32, #tpu.memory_space<vmem>>, %arg2: memref<16x128xf32, #tpu.memory_space<vmem>>, %arg3: memref<16x128xf32, #tpu.memory_space<vmem>>) attributes {dimension_semantics = [#tpu.dimension_semantics<parallel>], iteration_bounds = array<i64: 1>, scalar_prefetch = 0 : i64, scratch_operands = 0 : i64, tpu.core_type = #tpu.core_type<tc>, window_params = [{transform_indices = @transform_0, window_bounds = array<i64: 16, 128>}, {transform_indices = @transform_1, window_bounds = array<i64: 16, 128>}, {transform_indices = @transform_2, window_bounds = array<i64: 16, 128>}]} {
    %c0 = arith.constant 0 : index
    %c0_0 = arith.constant 0 : index
    %0 = vector.load %arg1[%c0, %c0_0] : memref<16x128xf32, #tpu.memory_space<vmem>>, vector<16x128xf32>
    %c0_1 = arith.constant 0 : index
    %c0_2 = arith.constant 0 : index
    %1 = vector.load %arg2[%c0_1, %c0_2] : memref<16x128xf32, #tpu.memory_space<vmem>>, vector<16x128xf32>
    %2 = math.absf %0 : vector<16x128xf32>
    %cst = arith.constant 0.000000e+00 : f32
    %3 = vector.broadcast %cst : f32 to vector<16x128xf32>
    %4 = arith.subf %3, %2 : vector<16x128xf32>
    %5 = math.exp %4 : vector<16x128xf32>
    %cst_3 = arith.constant 0.000000e+00 : f32
    %6 = vector.broadcast %cst_3 : f32 to vector<16x128xf32>
    %7 = arith.maximumf %0, %6 : vector<16x128xf32>
    %8 = arith.mulf %0, %1 : vector<16x128xf32>
    %9 = arith.subf %7, %8 : vector<16x128xf32>
    %10 = math.log1p %5 : vector<16x128xf32>
    %11 = arith.addf %9, %10 : vector<16x128xf32>
    %cst_4 = arith.constant 0.000000e+00 : f32
    %12 = vector.broadcast %cst_4 : f32 to vector<16x128xf32>
    %13 = arith.cmpf oge, %0, %12 : vector<16x128xf32>
    %cst_5 = arith.constant 1.000000e+00 : f32
    %14 = vector.broadcast %cst_5 : f32 to vector<16x128xf32>
    %15 = arith.select %13, %14, %5 : vector<16x128xi1>, vector<16x128xf32>
    %cst_6 = arith.constant 1.000000e+00 : f32
    %16 = vector.broadcast %cst_6 : f32 to vector<16x128xf32>
    %17 = arith.addf %16, %5 : vector<16x128xf32>
    %18 = arith.divf %15, %17 : vector<16x128xf32>
    %19 = arith.addf %18, %1 : vector<16x128xf32>
    %cst_7 = arith.constant 2.000000e+00 : f32
    %20 = vector.broadcast %cst_7 : f32 to vector<16x128xf32>
    %21 = arith.mulf %20, %18 : vector<16x128xf32>
    %22 = arith.mulf %21, %1 : vector<16x128xf32>
    %23 = arith.subf %19, %22 : vector<16x128xf32>
    %24 = arith.mulf %23, %23 : vector<16x128xf32>
    %25 = arith.mulf %11, %24 : vector<16x128xf32>
    %cst_8 = arith.constant -5.000000e-01 : f32
    %26 = vector.broadcast %cst_8 : f32 to vector<16x128xf32>
    %27 = arith.mulf %26, %1 : vector<16x128xf32>
    %cst_9 = arith.constant 7.500000e-01 : f32
    %28 = vector.broadcast %cst_9 : f32 to vector<16x128xf32>
    %29 = arith.addf %28, %27 : vector<16x128xf32>
    %30 = arith.mulf %29, %25 : vector<16x128xf32>
    %c0_10 = arith.constant 0 : index
    %c0_11 = arith.constant 0 : index
    %31 = vector.load %arg3[%c0_10, %c0_11] : memref<16x128xf32, #tpu.memory_space<vmem>>, vector<16x128xf32>
    tpu.vector_store %arg3[%c0_10, %c0_11], %30 {strides = array<i32>} : memref<16x128xf32, #tpu.memory_space<vmem>>, vector<16x128xf32>,
    return
  }
  func.func @transform_0(%arg0: i32) -> (i32, i32) {
    %c0_i32 = arith.constant 0 : i32
    %c0_i32_0 = arith.constant 0 : i32
    return %arg0, %c0_i32 : i32, i32
  }
  func.func @transform_1(%arg0: i32) -> (i32, i32) {
    %c0_i32 = arith.constant 0 : i32
    %c0_i32_0 = arith.constant 0 : i32
    return %arg0, %c0_i32 : i32, i32
  }
  func.func @transform_2(%arg0: i32) -> (i32, i32) {
    %c0_i32 = arith.constant 0 : i32
    %c0_i32_0 = arith.constant 0 : i32
    return %arg0, %c0_i32 : i32, i32
  }
}

</mosaic_0001>

<bundles_post_ra>
// kernel: tpu_custom_call.1
= control target key start
LH: loop header
LB: loop body
LE: loop exit
PB: predicated region body
PF: predicated region fallthrough
CT: control target
= control target key end

     0   :  { %7 = vsyncpa [#allocation3], 0  ;;  %s286_s0 = inlined_call_operand.hbm [shape: f32[16,128], index: 0, kind: input, shape index: {}]   ;;  %s287_s1 = inlined_call_operand.hbm [shape: f32[16,128], index: 1, kind: input, shape index: {}]   ;;  %s288_s2 = inlined_call_operand.hbm [shape: f32[16,128], index: 2, kind: output, shape index: {}]  }
   0x1   :  { %8 = vsyncpa [#allocation6], 0 }
   0x2   :  { %9 = vsyncpa [#allocation4], 0  ;;  %s215_s9 = smov [#allocation2]   ;;  %s143_s13 = scalar_lea.hbm %s286_s0, 256 }
   0x3   :  { %s15_s10 = sshll.u32 %s215_s9, 4  ;;  %p144_p0 = scmp.ne.s32.totalorder %s286_s0, %s143_s13  ;;  %s16_s10 = int_to_ptr.vmem [resolvable:$true] %s15_s10 }
   0x4   :  { %p147_p1 = scmp.lt.u32.totalorder %s143_s13, %s286_s0 }
   0x6   :  { %p149_p2 = pnand %p147_p1, %p144_p0 }
   0x8   :  { %152 = shalt.err (!%p149_p2)
}
   0x9   :  { %s153_s18 = scalar_lea.vmem %s16_s10, 256  ;;  %p158_p4 = scmp.lt.s32.totalorder %s16_s10, %s16_s10 }
   0xa   :  { %p154_p3 = scmp.ne.s32.totalorder %s16_s10, %s153_s18  ;;  %p159_p5 = scmp.lt.s32.totalorder %s153_s18, %s153_s18 }
   0xc   :  { %p160_p6 = por %p159_p5, %p158_p4 }
   0xe   :  { %p161_p7 = pnand %p160_p6, %p154_p3 }
  0x10   :  { %164 = shalt.err (!%p161_p7)
}
  0x11   :  { %s216_s19 = smov 128   ;;  %s217_s20 = smov 8  }
  0x12   :  { %21 = dma.hbm_to_vmem [thread:$0]  %s286_s0, 256, %s16_s10, [#allocation3], %s216_s19, %s216_s19, %s217_s20  }
  0x13   :  { %s218_s23 = smov [#allocation5]   ;;  %s165_s27 = scalar_lea.hbm %s287_s1, 256 }
  0x14   :  { %s27_s24 = sshll.u32 %s218_s23, 4  ;;  %p166_p8 = scmp.ne.s32.totalorder %s287_s1, %s165_s27  ;;  %s28_s24 = int_to_ptr.vmem [resolvable:$true] %s27_s24 }
  0x15   :  { %p169_p9 = scmp.lt.u32.totalorder %s165_s27, %s287_s1 }
  0x17   :  { %p171_p10 = pnand %p169_p9, %p166_p8 }
  0x19   :  { %174 = shalt.err (!%p171_p10)
}
  0x1a   :  { %s175_s4 = scalar_lea.vmem %s28_s24, 256  ;;  %p180_p12 = scmp.lt.s32.totalorder %s28_s24, %s28_s24 }
  0x1b   :  { %p176_p11 = scmp.ne.s32.totalorder %s28_s24, %s175_s4  ;;  %p181_p13 = scmp.lt.s32.totalorder %s175_s4, %s175_s4 }
  0x1d   :  { %p182_p0 = por %p181_p13, %p180_p12 }
  0x1f   :  { %p183_p1 = pnand %p182_p0, %p176_p11 }
  0x21   :  { %186 = shalt.err (!%p183_p1)
}
  0x22   :  { %33 = dma.hbm_to_vmem [thread:$0]  %s287_s1, 256, %s28_s24, [#allocation6], %s216_s19, %s216_s19, %s217_s20  }
  0x23   :  { %209 = dma.done.wait [#allocation3], 256  }
  0x24   :  { %210 = vsyncadd [#allocation3], 4294967040 }
  0x25   :  { %211 = dma.done.wait [#allocation6], 256  }
  0x26   :  { %212 = vsyncadd [#allocation6], 4294967040  ;;  %v40_v0 = vld [vmem:[#allocation2] sm:$0xff]  ;;  %v41_v1 = vld [vmem:[#allocation2 + $0x8] sm:$0xff]  ;;  %s219_s1 = smov [#allocation7]  }
  0x27   :  { %v44_v2 = vand.u32 2147483647, %v40_v0  ;;  %v45_v3 = vand.u32 2147483647, %v41_v1  ;;  %v42_v14 = vld [vmem:[#allocation5] sm:$0xff]  ;;  %vm78_vm0 = vcmp.ge.f32.partialorder %v40_v0, 0.0 }
  0x28   :  { %vm79_vm1 = vcmp.ge.f32.partialorder %v41_v1, 0.0  ;;  %v52_v17 = vmax.f32 %v40_v0, 0.0  ;;  %v54_v18 = vmul.f32 %v42_v14, %v40_v0  ;;  %v43_v20 = vld [vmem:[#allocation5 + $0x8] sm:$0xff]  ;;  %v53_v31 = vmax.f32 %v41_v1, 0.0  ;;  %s113_s6 = sshll.u32 %s219_s1, 4  ;;  %s114_s6 = int_to_ptr.vmem [resolvable:$true] %s113_s6 }
  0x29   :  { %v46_v4 = vsub.f32 0.0, %v44_v2  ;;  %v47_v5 = vsub.f32 0.0, %v45_v3  ;;  %v55_v32 = vmul.f32 %v43_v20, %v41_v1  ;;  %v100_v41 = vmul.f32 -0.5, %v42_v14  ;;  %s187_s7 = scalar_lea.vmem %s114_s6, 256  ;;  %p192_p3 = scmp.lt.s32.totalorder %s114_s6, %s114_s6 }
  0x2a   :  { %v56_v34 = vsub.f32 %v52_v17, %v54_v18  ;;  %v101_v50 = vmul.f32 -0.5, %v43_v20  ;;  %p188_p2 = scmp.ne.s32.totalorder %s114_s6, %s187_s7  ;;  %p193_p4 = scmp.lt.s32.totalorder %s187_s7, %s187_s7 }
  0x2b   :  { %v48_v6 = vmul.f32 1.442695, %v46_v4  ;;  %v50_v7 = vmul.f32 1.442695, %v47_v5  ;;  %v57_v43 = vsub.f32 %v53_v31, %v55_v32  ;;  %v102_v52 = vadd.f32 0.75, %v100_v41 }
  0x2c   :  { %v103_v57 = vadd.f32 0.75, %v101_v50  ;;  %p194_p5 = por %p193_p4, %p192_p3 }
  0x2d   :  { %131 = vpow2.f32 %v48_v6 }
  0x2e   :  { %133 = vpow2.f32 %v50_v7  ;;  %p195_p6 = pnand %p194_p5, %p188_p2 }
  0x37   :  { %v132_v8 = vpop.eup %131 }
  0x38   :  { %v134_v9 = vpop.eup %133  ;;  %v58_v10 = vadd.f32 1.0, %v132_v8  ;;  %v61_v12 = vmul.f32 -0.5, %v132_v8  ;;  %v64_v16 = vand.u32 2147483647, %v132_v8  ;;  %v80_v19 = vsel %vm78_vm0, 1.0, %v132_v8 }
  0x39   :  { %v67_v11 = vadd.f32 1.0, %v134_v9  ;;  %v70_v13 = vmul.f32 -0.5, %v134_v9  ;;  %v73_v23 = vand.u32 2147483647, %v134_v9  ;;  %v81_v27 = vsel %vm79_vm1, 1.0, %v134_v9 }
  0x3a   :  { %135 = vlog2.f32 %v58_v10  ;;  %v62_v15 = vadd.f32 1.0, %v61_v12  ;;  %vm265_vm2 = vcmp.lt.f32.partialorder %v64_v16, 0.0004427343 }
  0x3b   :  { %137 = vrcp.f32 %v58_v10  ;;  %v71_v21 = vadd.f32 1.0, %v70_v13  ;;  %vm74_vm3 = vcmp.lt.f32.partialorder %v73_v23, 0.0004427343 }
  0x3c   :  { %139 = vlog2.f32 %v67_v11  ;;  %v63_v26 = vmul.f32 %v132_v8, %v62_v15 }
  0x3d   :  { %141 = vrcp.f32 %v67_v11  ;;  %v72_v36 = vmul.f32 %v134_v9, %v71_v21 }
  0x44   :  { %v136_v22 = vpop.eup %135 }
  0x45   :  { %v138_v24 = vpop.eup %137  ;;  %v60_v25 = vmul.f32 0.6931472, %v136_v22 }
  0x46   :  { %v140_v28 = vpop.eup %139  ;;  %v85_v30 = vmul.f32 %v138_v24, %v80_v19 }
  0x47   :  { %v142_v33 = vpop.eup %141  ;;  %v69_v35 = vmul.f32 0.6931472, %v140_v28  ;;  %v66_v40 = vsel %vm265_vm2, %v63_v26, %v60_v25 }
  0x48   :  { %v88_v37 = vadd.f32 %v85_v30, %v42_v14  ;;  %v90_v38 = vmul.f32 2.0, %v85_v30  ;;  %v87_v39 = vmul.f32 %v142_v33, %v81_v27  ;;  %v76_v47 = vadd.f32 %v66_v40, %v56_v34 }
  0x49   :  { %v75_v46 = vsel %vm74_vm3, %v72_v36, %v69_v35 }
  0x4a   :  { %v92_v42 = vmul.f32 %v90_v38, %v42_v14  ;;  %v89_v44 = vadd.f32 %v87_v39, %v43_v20  ;;  %v91_v45 = vmul.f32 2.0, %v87_v39  ;;  %v77_v53 = vadd.f32 %v75_v46, %v57_v43 }
  0x4c   :  { %v94_v48 = vsub.f32 %v88_v37, %v92_v42  ;;  %v93_v49 = vmul.f32 %v91_v45, %v43_v20 }
  0x4e   :  { %v96_v51 = vmul.f32 %v94_v48, %v94_v48  ;;  %v95_v54 = vsub.f32 %v89_v44, %v93_v49 }
  0x50   :  { %v98_v55 = vmul.f32 %v96_v51, %v76_v47  ;;  %v97_v56 = vmul.f32 %v95_v54, %v95_v54 }
  0x52   :  { %v104_v58 = vmul.f32 %v102_v52, %v98_v55  ;;  %v99_v59 = vmul.f32 %v97_v56, %v77_v53 }
  0x54   :  { %106 = vst [vmem:[#allocation7] sm:$0xff] %v104_v58  ;;  %v105_v60 = vmul.f32 %v103_v57, %v99_v59 }
  0x56   :  { %107 = vst [vmem:[#allocation7 + $0x8] sm:$0xff] %v105_v60 }
  0x57   :  { %198 = shalt.err (!%p195_p6)
}
  0x58   :  { %s199_s10 = scalar_lea.hbm %s288_s2, 256 }
  0x59   :  { %p200_p7 = scmp.ne.s32.totalorder %s288_s2, %s199_s10  ;;  %p203_p8 = scmp.lt.u32.totalorder %s199_s10, %s288_s2 }
  0x5b   :  { %p205_p9 = pnand %p203_p8, %p200_p7 }
  0x5d   :  { %208 = shalt.err (!%p205_p9)
}
  0x5e   :  { %119 = dma.vmem_to_hbm [thread:$0]  %s114_s6, 256, %s288_s2, [#allocation4], %s216_s19, %s216_s19, %s217_s20  }
  0x5f   :  { %213 = dma.done.wait [#allocation4], 256  }
  0x60   :  { %214 = vsyncadd [#allocation4], 4294967040 }
  0x61   :  { %123 = vsyncpa [#allocation3], 1 }
  0x62   :  { %124 = vsyncpa [#allocation6], 1 }
  0x63   :  { %125 = vsyncpa [#allocation4], 1 }

</bundles_post_ra>
